<compile_context>
chip_gen: v7x
topology: tpu7x:2x2x1
jax: 0.10.0
libtpu: 0.0.40
codegen_flags: <defaults>
</compile_context>

<pallas_src>
import functools

import jax
import jax.numpy as jnp
from jax.experimental import pallas as pl
from jax.experimental.pallas import tpu as pltpu


def _round_up(a, m):
    return ((a + m - 1) // m) * m


def _supports_buffered_blockspec():
    """Feature check (not a blanket except around the real call): does this jax build
    support BlockSpec(pipeline_mode=pl.Buffered(1)) for grid-invariant operands?"""
    try:
        pl.BlockSpec((8, 128), lambda i: (0, 0), pipeline_mode=pl.Buffered(1))
        return True
    except (AttributeError, TypeError):
        return False


_HAS_BUFFERED = _supports_buffered_blockspec()


def _num_tensorcores_per_chip():
    """v7x has 2 TensorCores per chip; v5e/v6e have 1. Default to 1 if unknown."""
    try:
        kind = jax.devices()[0].device_kind.lower()
    except Exception:
        return 1
    return 2 if "v7" in kind else 1


def _adapter_kernel(x_ref, wlin_ref, blin_ref, w1_ref, w2_ref, out_ref, *,
                    alpha, adapter_scale):
    # x_ref:    (TB, Din_p)     any float dtype (cast per-tile in-kernel)
    # wlin_ref: (Din_p, Dout_p) proj dtype (bf16 default / f32 optional), pre-transposed
    # blin_ref: (1, Dout_p)     f32    frozen projection bias
    # w1_ref:   (Dout_p, Dh_p)  bf16   adapter down-proj, pre-transposed, no bias
    # w2_ref:   (Dh_p, Dout_p)  bf16   adapter up-proj, pre-transposed, (1-alpha) folded in
    # out_ref:  (TB, Dout_p)
    x = x_ref[...].astype(wlin_ref.dtype)

    # Frozen projection: image_features = x @ W_lin^T + b  (f32 MXU accumulation).
    h = jnp.dot(x, wlin_ref[...], preferred_element_type=jnp.float32)
    h = h + blin_ref[...]

    # Adapter bottleneck MLP with ReLU after each layer (original runs fc in fp16;
    # here bf16 inputs with f32 accumulation).
    z1 = jnp.maximum(
        jnp.dot(h.astype(w1_ref.dtype), w1_ref[...],
                preferred_element_type=jnp.float32), 0.0)
    z2 = jnp.maximum(
        jnp.dot(z1.astype(w2_ref.dtype), w2_ref[...],
                preferred_element_type=jnp.float32), 0.0)
    if adapter_scale != 1.0:  # only when (1 - alpha) < 0 and could not be folded into W2
        z2 = adapter_scale * z2

    # Residual blend: alpha * image_features + (1 - alpha) * adapter_out.
    out_ref[...] = (alpha * h + z2).astype(out_ref.dtype)


def prepare_clip_adapter_params(weight, bias, w_fc1, w_fc2, alpha, *,
                                proj_dtype=jnp.bfloat16):
    """One-time parameter preparation (at model load, NOT per forward call):
      * transpose PyTorch (out, in) weights to (in, out),
      * zero-pad all feature dims to multiples of 128 (lane-dense tiles, unmasked stores),
      * cast adapter weights to bf16 (the original `fc` runs in fp16),
      * fold (1 - alpha) into W2 when 1 - alpha >= 0 (ReLU is positively homogeneous).
    Set proj_dtype=jnp.float32 to keep the frozen CLIP projection exactly in f32 like
    the PyTorch module (bf16 default trades a tiny projection error for bf16 MXU rate
    and half the resident W_lin VMEM)."""
    output_dim, input_dim = weight.shape
    hidden = w_fc1.shape[0]
    din_p = _round_up(input_dim, 128)
    dout_p = _round_up(output_dim, 128)
    dh_p = _round_up(hidden, 128)

    def pad2(a, rows, cols):
        return jnp.pad(a, ((0, rows - a.shape[0]), (0, cols - a.shape[1])))

    alpha = float(alpha)
    one_minus_alpha = 1.0 - alpha
    fold = one_minus_alpha >= 0.0             # ReLU(c*x) == c*ReLU(x) requires c >= 0
    adapter_scale = 1.0 if fold else one_minus_alpha
    w2_scale = one_minus_alpha if fold else 1.0

    wlin_t = pad2(jnp.asarray(weight, jnp.float32).T, din_p, dout_p).astype(proj_dtype)
    blin = pad2(jnp.asarray(bias, jnp.float32).reshape(1, output_dim), 1, dout_p)  # f32
    w1_t = pad2(jnp.asarray(w_fc1, jnp.float32).T, dout_p, dh_p).astype(jnp.bfloat16)
    w2_t = pad2(w2_scale * jnp.asarray(w_fc2, jnp.float32).T,
                dh_p, dout_p).astype(jnp.bfloat16)

    return dict(wlin=wlin_t, blin=blin, w1=w1_t, w2=w2_t,
                alpha=alpha, adapter_scale=adapter_scale,
                input_dim=input_dim, output_dim=output_dim, hidden=hidden,
                din_p=din_p, dout_p=dout_p, dh_p=dh_p)


def clip_adapter_rn(params, x, *, tile_b=None, out_dtype=jnp.float32,
                    single_buffer_weights=None):
    """Forward pass: x (B, input_dim) -> (B, output_dim).
    out_dtype=jnp.bfloat16 halves the HBM writeback (largest stream on mem-bound v6e)
    if downstream cosine-similarity / logit math tolerates it."""
    B, input_dim = x.shape
    assert input_dim == params["input_dim"], "input feature dim mismatch"
    din_p, dout_p, dh_p = params["din_p"], params["dout_p"], params["dh_p"]
    output_dim = params["output_dim"]

    # --- batch tiling ----------------------------------------------------------
    num_tc = _num_tensorcores_per_chip()
    b_aligned = _round_up(B, 16)              # bf16 sublane packing
    if tile_b is None:
        if num_tc >= 2 and b_aligned >= 32:
            # v7x: guarantee >= num_tc grid steps so both TensorCores get a block
            # (grid axis is "parallel"); cap at 512 rows per step.
            tile_b = min(512, _round_up(pl.cdiv(b_aligned, num_tc), 16))
        else:
            # Single-TC chips (v5e/v6e): one big tile -- full MXU M-dim, fewer
            # ~0.35 us grid-step epilogues, longer DMA bursts.
            tile_b = min(512, b_aligned)
    tile_b = max(16, _round_up(tile_b, 16))
    b_pad = _round_up(B, tile_b)

    # --- x operand: no wrapper-side passes in the common case -------------------
    # CLIP feature dims (512/640/768/1024/2048) are already 128-multiples, so with an
    # aligned batch x goes straight into pallas_call (zero extra HBM traffic); any
    # dtype cast happens per-tile inside the kernel.  Padding, when needed, keeps
    # x's own dtype.
    if b_pad == B and din_p == input_dim:
        x_p = x
    else:
        x_p = jnp.pad(x, ((0, b_pad - B), (0, din_p - input_dim)))

    if single_buffer_weights is None:
        single_buffer_weights = _HAS_BUFFERED

    def invariant_spec(shape):
        # Grid-invariant operand (constant index_map): one VMEM copy suffices.
        if single_buffer_weights:
            return pl.BlockSpec(shape, lambda i: (0, 0), pipeline_mode=pl.Buffered(1))
        return pl.BlockSpec(shape, lambda i: (0, 0))

    # --- right-size the scoped-VMEM request --------------------------------------
    # Computed from the actual buffer set (+~50% headroom), capped well below v7x's
    # 64 MiB physical per-TC VMEM (previous version asked for all 64 MiB).
    wbuf = 1 if single_buffer_weights else 2
    need = (params["wlin"].size * params["wlin"].dtype.itemsize
            + params["blin"].size * params["blin"].dtype.itemsize
            + params["w1"].size * 2 + params["w2"].size * 2) * wbuf
    need += 2 * tile_b * din_p * jnp.dtype(x_p.dtype).itemsize        # x double-buffer
    need += 2 * tile_b * dout_p * jnp.dtype(out_dtype).itemsize       # out double-buffer
    vmem_limit = min(40 << 20, max(16 << 20, need + need // 2 + (2 << 20)))

    kernel = functools.partial(_adapter_kernel, alpha=params["alpha"],
                               adapter_scale=params["adapter_scale"])
    out_p = pl.pallas_call(
        kernel,
        out_shape=jax.ShapeDtypeStruct((b_pad, dout_p), out_dtype),
        grid_spec=pltpu.PrefetchScalarGridSpec(
            num_scalar_prefetch=0,
            grid=(b_pad // tile_b,),
            in_specs=[
                pl.BlockSpec((tile_b, din_p), lambda i: (i, 0)),   # x tile (pipelined)
                invariant_spec((din_p, dout_p)),                   # W_lin^T
                invariant_spec((1, dout_p)),                       # bias
                invariant_spec((dout_p, dh_p)),                    # W1^T
                invariant_spec((dh_p, dout_p)),                    # W2^T (x (1-alpha))
            ],
            out_specs=pl.BlockSpec((tile_b, dout_p), lambda i: (i, 0)),
        ),
        compiler_params=pltpu.CompilerParams(
            dimension_semantics=("parallel",),
            vmem_limit_bytes=vmem_limit,
        ),
    )(x_p, params["wlin"], params["blin"], params["w1"], params["w2"])

    return out_p[:B, :output_dim]


def _reference(x, weight, bias, w_fc1, w_fc2, alpha):
    h = x @ weight.T + bias
    z = jnp.maximum(h @ w_fc1.T, 0.0)
    z = jnp.maximum(z @ w_fc2.T, 0.0)
    return alpha * h + (1.0 - alpha) * z


if __name__ == "__main__":
    # Small shapes consistent with the module's forward:
    #   x_before_proj: (B, input_dim), weight: (output_dim, input_dim)
    B, input_dim, output_dim = 16, 32, 64
    reduction, alpha = 4, 0.2
    hidden = output_dim // reduction

    key = jax.random.PRNGKey(0)
    k_x, k_w, k_b, k_f1, k_f2 = jax.random.split(key, 5)

    x = jax.random.normal(k_x, (B, input_dim), dtype=jnp.float32)
    weight = jax.random.normal(k_w, (output_dim, input_dim), dtype=jnp.float32) * 0.05
    bias = jax.random.normal(k_b, (output_dim,), dtype=jnp.float32) * 0.01
    w_fc1 = jax.random.normal(k_f1, (hidden, output_dim), dtype=jnp.float32) * 0.05
    w_fc2 = jax.random.normal(k_f2, (output_dim, hidden), dtype=jnp.float32) * 0.05

    params = prepare_clip_adapter_params(weight, bias, w_fc1, w_fc2, alpha)
    out = jax.block_until_ready(clip_adapter_rn(params, x))

    ref = _reference(x, weight, bias, w_fc1, w_fc2, alpha)
    assert out.shape == (B, output_dim)
    assert out.dtype == jnp.float32
    # bf16 matmuls with f32 accumulation vs. an all-f32 reference -> loose tolerance.
    assert jnp.allclose(out, ref, atol=2e-2, rtol=2e-2), "mismatch vs reference"

    print("KERNEL_OK")
</pallas_src>

<mosaic_0001>
module attributes {stable_mosaic.version = 11 : i64} {
  func.func @_adapter_kernel(%arg0: i32, %arg1: memref<16x128xf32, #tpu.memory_space<vmem>>, %arg2: memref<128x128xbf16, #tpu.memory_space<vmem>>, %arg3: memref<1x128xf32, #tpu.memory_space<vmem>>, %arg4: memref<128x128xbf16, #tpu.memory_space<vmem>>, %arg5: memref<128x128xbf16, #tpu.memory_space<vmem>>, %arg6: memref<16x128xf32, #tpu.memory_space<vmem>>) attributes {dimension_semantics = [#tpu.dimension_semantics<parallel>], iteration_bounds = array<i64: 1>, scalar_prefetch = 0 : i64, scratch_operands = 0 : i64, tpu.core_type = #tpu.core_type<tc>, window_params = [{transform_indices = @transform_0, window_bounds = array<i64: 16, 128>}, {pipeline_mode = #tpu.pipeline_mode<synchronous>, transform_indices = @transform_1, window_bounds = array<i64: 128, 128>}, {pipeline_mode = #tpu.pipeline_mode<synchronous>, transform_indices = @transform_2, window_bounds = array<i64: 1, 128>}, {pipeline_mode = #tpu.pipeline_mode<synchronous>, transform_indices = @transform_3, window_bounds = array<i64: 128, 128>}, {pipeline_mode = #tpu.pipeline_mode<synchronous>, transform_indices = @transform_4, window_bounds = array<i64: 128, 128>}, {transform_indices = @transform_5, window_bounds = array<i64: 16, 128>}]} {
    %c0 = arith.constant 0 : index
    %c0_0 = arith.constant 0 : index
    %0 = vector.load %arg1[%c0, %c0_0] : memref<16x128xf32, #tpu.memory_space<vmem>>, vector<16x128xf32>
    %1 = arith.truncf %0 : vector<16x128xf32> to vector<16x128xbf16>
    %c0_1 = arith.constant 0 : index
    %c0_2 = arith.constant 0 : index
    %2 = vector.load %arg2[%c0_1, %c0_2] : memref<128x128xbf16, #tpu.memory_space<vmem>>, vector<128x128xbf16>
    %cst = arith.constant dense<0.000000e+00> : vector<16x128xf32>
    %3 = tpu.matmul %1, %2, %cst {dimension_numbers = #tpu.dot_dimension_numbers<[1], [0], [0], [1], [0, 0, 1, 1], [], []>} : vector<16x128xbf16>, vector<128x128xbf16>, vector<16x128xf32> -> vector<16x128xf32>
    %c0_3 = arith.constant 0 : index
    %c0_4 = arith.constant 0 : index
    %4 = vector.load %arg3[%c0_3, %c0_4] : memref<1x128xf32, #tpu.memory_space<vmem>>, vector<1x128xf32>
    %5 = vector.broadcast %4 : vector<1x128xf32> to vector<16x128xf32>
    %6 = arith.addf %3, %5 : vector<16x128xf32>
    %7 = arith.truncf %6 : vector<16x128xf32> to vector<16x128xbf16>
    %c0_5 = arith.constant 0 : index
    %c0_6 = arith.constant 0 : index
    %8 = vector.load %arg4[%c0_5, %c0_6] : memref<128x128xbf16, #tpu.memory_space<vmem>>, vector<128x128xbf16>
    %cst_7 = arith.constant dense<0.000000e+00> : vector<16x128xf32>
    %9 = tpu.matmul %7, %8, %cst_7 {dimension_numbers = #tpu.dot_dimension_numbers<[1], [0], [0], [1], [0, 0, 1, 1], [], []>} : vector<16x128xbf16>, vector<128x128xbf16>, vector<16x128xf32> -> vector<16x128xf32>
    %cst_8 = arith.constant 0.000000e+00 : f32
    %10 = vector.broadcast %cst_8 : f32 to vector<16x128xf32>
    %11 = arith.maximumf %9, %10 : vector<16x128xf32>
    %12 = arith.truncf %11 : vector<16x128xf32> to vector<16x128xbf16>
    %c0_9 = arith.constant 0 : index
    %c0_10 = arith.constant 0 : index
    %13 = vector.load %arg5[%c0_9, %c0_10] : memref<128x128xbf16, #tpu.memory_space<vmem>>, vector<128x128xbf16>
    %cst_11 = arith.constant dense<0.000000e+00> : vector<16x128xf32>
    %14 = tpu.matmul %12, %13, %cst_11 {dimension_numbers = #tpu.dot_dimension_numbers<[1], [0], [0], [1], [0, 0, 1, 1], [], []>} : vector<16x128xbf16>, vector<128x128xbf16>, vector<16x128xf32> -> vector<16x128xf32>
    %cst_12 = arith.constant 0.000000e+00 : f32
    %15 = vector.broadcast %cst_12 : f32 to vector<16x128xf32>
    %16 = arith.maximumf %14, %15 : vector<16x128xf32>
    %cst_13 = arith.constant 2.000000e-01 : f32
    %17 = vector.broadcast %cst_13 : f32 to vector<16x128xf32>
    %18 = arith.mulf %17, %6 : vector<16x128xf32>
    %19 = arith.addf %18, %16 : vector<16x128xf32>
    %c0_14 = arith.constant 0 : index
    %c0_15 = arith.constant 0 : index
    %20 = vector.load %arg6[%c0_14, %c0_15] : memref<16x128xf32, #tpu.memory_space<vmem>>, vector<16x128xf32>
    tpu.vector_store %arg6[%c0_14, %c0_15], %19 {strides = array<i32>} : memref<16x128xf32, #tpu.memory_space<vmem>>, vector<16x128xf32>,
    return
  }
  func.func @transform_0(%arg0: i32) -> (i32, i32) {
    %c0_i32 = arith.constant 0 : i32
    %c0_i32_0 = arith.constant 0 : i32
    return %arg0, %c0_i32 : i32, i32
  }
  func.func @transform_1(%arg0: i32) -> (i32, i32) {
    %c0_i32 = arith.constant 0 : i32
    %c0_i32_0 = arith.constant 0 : i32
    %c0_i32_1 = arith.constant 0 : i32
    return %c0_i32, %c0_i32_0 : i32, i32
  }
  func.func @transform_2(%arg0: i32) -> (i32, i32) {
    %c0_i32 = arith.constant 0 : i32
    %c0_i32_0 = arith.constant 0 : i32
    %c0_i32_1 = arith.constant 0 : i32
    return %c0_i32, %c0_i32_0 : i32, i32
  }
  func.func @transform_3(%arg0: i32) -> (i32, i32) {
    %c0_i32 = arith.constant 0 : i32
    %c0_i32_0 = arith.constant 0 : i32
    %c0_i32_1 = arith.constant 0 : i32
    return %c0_i32, %c0_i32_0 : i32, i32
  }
  func.func @transform_4(%arg0: i32) -> (i32, i32) {
    %c0_i32 = arith.constant 0 : i32
    %c0_i32_0 = arith.constant 0 : i32
    %c0_i32_1 = arith.constant 0 : i32
    return %c0_i32, %c0_i32_0 : i32, i32
  }
  func.func @transform_5(%arg0: i32) -> (i32, i32) {
    %c0_i32 = arith.constant 0 : i32
    %c0_i32_0 = arith.constant 0 : i32
    return %arg0, %c0_i32 : i32, i32
  }
}

</mosaic_0001>

<bundles_post_ra>
// kernel: tpu_custom_call.1
= control target key start
LH: loop header
LB: loop body
LE: loop exit
PB: predicated region body
PF: predicated region fallthrough
CT: control target
= control target key end

     0   :  { %10 = vsyncpa [#allocation3], 0  ;;  %s854_s0 = inlined_call_operand.hbm [shape: f32[16,128], index: 0, kind: input, shape index: {}]   ;;  %s855_s1 = inlined_call_operand.hbm [shape: bf16[128,128], index: 1, kind: input, shape index: {}]   ;;  %s856_s2 = inlined_call_operand.vmem [shape: f32[1,128], index: 2, kind: input, shape index: {}]   ;;  %s857_s3 = inlined_call_operand.hbm [shape: bf16[128,128], index: 3, kind: input, shape index: {}]   ;;  %s858_s4 = inlined_call_operand.hbm [shape: bf16[128,128], index: 4, kind: input, shape index: {}]   ;;  %s859_s5 = inlined_call_operand.hbm [shape: f32[16,128], index: 5, kind: output, shape index: {}]  }
   0x1   :  { %11 = vsyncpa [#allocation6], 0 }
   0x2   :  { %12 = vsyncpa [#allocation9], 0 }
   0x3   :  { %13 = vsyncpa [#allocation4], 0  ;;  %s698_s18 = smov [#allocation5]   ;;  %s580_s22 = scalar_lea.hbm %s855_s1, 1024 }
   0x4   :  { %s31_s19 = sshll.u32 %s698_s18, 4  ;;  %p581_p0 = scmp.ne.s32.totalorder %s855_s1, %s580_s22  ;;  %s32_s19 = int_to_ptr.vmem [resolvable:$true] %s31_s19 }
   0x5   :  { %p584_p1 = scmp.lt.u32.totalorder %s580_s22, %s855_s1 }
   0x7   :  { %p586_p2 = pnand %p584_p1, %p581_p0 }
   0x9   :  { %589 = shalt.err (!%p586_p2)
}
   0xa   :  { %s590_s27 = scalar_lea.vmem %s32_s19, 1024  ;;  %p595_p4 = scmp.lt.s32.totalorder %s32_s19, %s32_s19 }
   0xb   :  { %p591_p3 = scmp.ne.s32.totalorder %s32_s19, %s590_s27  ;;  %p596_p5 = scmp.lt.s32.totalorder %s590_s27, %s590_s27 }
   0xd   :  { %p597_p6 = por %p596_p5, %p595_p4 }
   0xf   :  { %p598_p7 = pnand %p597_p6, %p591_p3 }
  0x11   :  { %601 = shalt.err (!%p598_p7)
}
  0x12   :  { %s699_s28 = smov 64   ;;  %s700_s29 = smov 4  }
  0x13   :  { %37 = dma.hbm_to_vmem [thread:$0]  %s855_s1, 1024, %s32_s19, [#allocation6], %s699_s28, %s699_s28, %s700_s29  }
  0x14   :  { %s701_s7 = smov [#allocation2]   ;;  %s602_s11 = scalar_lea.hbm %s854_s0, 256 }
  0x15   :  { %s19_s8 = sshll.u32 %s701_s7, 4  ;;  %p603_p8 = scmp.ne.s32.totalorder %s854_s0, %s602_s11  ;;  %s20_s8 = int_to_ptr.vmem [resolvable:$true] %s19_s8 }
  0x16   :  { %p606_p9 = scmp.lt.u32.totalorder %s602_s11, %s854_s0 }
  0x18   :  { %p608_p10 = pnand %p606_p9, %p603_p8 }
  0x1a   :  { %611 = shalt.err (!%p608_p10)
}
  0x1b   :  { %s612_s16 = scalar_lea.vmem %s20_s8, 256  ;;  %p617_p12 = scmp.lt.s32.totalorder %s20_s8, %s20_s8 }
  0x1c   :  { %p613_p11 = scmp.ne.s32.totalorder %s20_s8, %s612_s16  ;;  %p618_p13 = scmp.lt.s32.totalorder %s612_s16, %s612_s16 }
  0x1e   :  { %p619_p0 = por %p618_p13, %p617_p12 }
  0x20   :  { %p620_p1 = pnand %p619_p0, %p613_p11 }
  0x22   :  { %623 = shalt.err (!%p620_p1)
}
  0x23   :  { %s702_s1 = smov 128   ;;  %s703_s17 = smov 8  }
  0x24   :  { %25 = dma.hbm_to_vmem [thread:$0]  %s854_s0, 256, %s20_s8, [#allocation3], %s702_s1, %s702_s1, %s703_s17  }
  0x25   :  { %s704_s20 = smov [#allocation7]   ;;  %s705_s22 = smov [#allocation8]  }
  0x26   :  { %s45_s21 = sshll.u32 %s704_s20, 4  ;;  %s57_s23 = sshll.u32 %s705_s22, 4  ;;  %s46_s21 = int_to_ptr.vmem [resolvable:$true] %s45_s21  ;;  %s769_s23 = int_to_ptr.vmem [resolvable:$true] %s57_s23 }
  0x27   :  { %s624_s26 = scalar_lea.hbm %s857_s3, 1024 }
  0x28   :  { %p625_p2 = scmp.ne.s32.totalorder %s857_s3, %s624_s26  ;;  %p628_p3 = scmp.lt.u32.totalorder %s624_s26, %s857_s3 }
  0x2a   :  { %p630_p4 = pnand %p628_p3, %p625_p2 }
  0x2c   :  { %633 = shalt.err (!%p630_p4)
}
  0x2d   :  { %s634_s0 = scalar_lea.vmem %s46_s21, 1024  ;;  %p639_p6 = scmp.lt.s32.totalorder %s46_s21, %s46_s21 }
  0x2e   :  { %p635_p5 = scmp.ne.s32.totalorder %s46_s21, %s634_s0  ;;  %p640_p7 = scmp.lt.s32.totalorder %s634_s0, %s634_s0 }
  0x30   :  { %p641_p8 = por %p640_p7, %p639_p6 }
  0x32   :  { %p642_p9 = pnand %p641_p8, %p635_p5 }
  0x34   :  { %645 = shalt.err (!%p642_p9)
}
  0x35   :  { %51 = dma.hbm_to_vmem [thread:$0]  %s857_s3, 1024, %s46_s21, [#allocation6], %s699_s28, %s699_s28, %s700_s29  }
  0x36   :  { %s646_s12 = scalar_lea.hbm %s858_s4, 1024 }
  0x37   :  { %p647_p10 = scmp.ne.s32.totalorder %s858_s4, %s646_s12  ;;  %p650_p11 = scmp.lt.u32.totalorder %s646_s12, %s858_s4 }
  0x39   :  { %p652_p12 = pnand %p650_p11, %p647_p10 }
  0x3b   :  { %655 = shalt.err (!%p652_p12)
}
  0x3c   :  { %s656_s18 = scalar_lea.vmem %s769_s23, 1024  ;;  %p661_p0 = scmp.lt.s32.totalorder %s769_s23, %s769_s23 }
  0x3d   :  { %p657_p13 = scmp.ne.s32.totalorder %s769_s23, %s656_s18  ;;  %p662_p1 = scmp.lt.s32.totalorder %s656_s18, %s656_s18 }
  0x3f   :  { %p663_p2 = por %p662_p1, %p661_p0 }
  0x41   :  { %p664_p3 = pnand %p663_p2, %p657_p13 }
  0x43   :  { %667 = shalt.err (!%p664_p3)
}
  0x44   :  { %63 = dma.hbm_to_vmem [thread:$0]  %s858_s4, 1024, %s769_s23, [#allocation9], %s699_s28, %s699_s28, %s700_s29  }
  0x45   :  { %690 = dma.done.wait [#allocation3], 256  }
  0x46   :  { %691 = vsyncadd [#allocation3], 4294967040 }
  0x47   :  { %692 = dma.done.wait [#allocation6], 2048  }
  0x48   :  { %693 = vsyncadd [#allocation6], 4294965248 }
  0x49   :  { %694 = dma.done.wait [#allocation9], 1024  }
  0x4a   :  { %695 = vsyncadd [#allocation9], 4294966272  ;;  %v706_v0 = vmov 0.0   ;;  %vm707_vm0 = vmmov 0   ;;  %v556_v1 = vld [vmem:[#allocation5] sm:$0xff]   ;;  %v557_v2 = vld [vmem:[#allocation5 + $0x8] sm:$0xff]  }
  0x4b   :  { %485 = vmatprep.subr.bf16.mxu0 %v706_v0  ;;  %501 = vmatprep.mubr.msk.bf16.mxu0 %vm707_vm0, %v706_v0  ;;  %v558_v3 = vld [vmem:[#allocation5 + $0x10] sm:$0xff]   ;;  %v564_v4 = vld [vmem:[#allocation7] sm:$0xff]   ;;  %v559_v5 = vld [vmem:[#allocation5 + $0x18] sm:$0xff]  }
  0x4c   :  { %505 = vmatprep.subr.bf16.mxu1 %v706_v0  ;;  %521 = vmatprep.mubr.msk.bf16.mxu1 %vm707_vm0, %v706_v0  ;;  %v565_v6 = vld [vmem:[#allocation7 + $0x8] sm:$0xff]   ;;  %v560_v7 = vld [vmem:[#allocation5 + $0x20] sm:$0xff]   ;;  %v566_v8 = vld [vmem:[#allocation7 + $0x10] sm:$0xff]  }
  0x4d   :  { %486 = vmatpush3.bf16.msra.mxu0 %v556_v1  ;;  %506 = vmatpush3.bf16.msra.mxu1 %v564_v4  ;;  %v561_v9 = vld [vmem:[#allocation5 + $0x28] sm:$0xff]   ;;  %v567_v10 = vld [vmem:[#allocation7 + $0x18] sm:$0xff]   ;;  %v562_v11 = vld [vmem:[#allocation5 + $0x30] sm:$0xff]  }
  0x4e   :  { %487 = vmatprep.subr.bf16.mxu0 %v706_v0  ;;  %507 = vmatprep.subr.bf16.mxu1 %v706_v0  ;;  %v568_v12 = vld [vmem:[#allocation7 + $0x20] sm:$0xff]   ;;  %v563_v13 = vld [vmem:[#allocation5 + $0x38] sm:$0xff]   ;;  %v77_v14 = vld [vmem:[#allocation2] sm:$0xff] }
  0x4f   :  { %v78_v15 = vld [vmem:[#allocation2 + $0x8] sm:$0xff]  ;;  %v569_v16 = vld [vmem:[#allocation7 + $0x28] sm:$0xff]   ;;  %v570_v18 = vld [vmem:[#allocation7 + $0x30] sm:$0xff]  }
  0x50   :  { %v79_v17 = vpack.c.bf16 %v78_v15, %v77_v14  ;;  %v571_v19 = vld [vmem:[#allocation7 + $0x38] sm:$0xff]   ;;  %v572_v20 = vld [vmem:[#allocation8] sm:$0xff]   ;;  %v573_v21 = vld [vmem:[#allocation8 + $0x8] sm:$0xff]  }
  0x51   :  { %488 = vmatpush3.bf16.msra.mxu0 %v557_v2  ;;  %508 = vmatpush3.bf16.msra.mxu1 %v565_v6  ;;  %v574_v22 = vld [vmem:[#allocation8 + $0x10] sm:$0xff]   ;;  %v575_v23 = vld [vmem:[#allocation8 + $0x18] sm:$0xff]   ;;  %v576_v24 = vld [vmem:[#allocation8 + $0x20] sm:$0xff]  }
  0x52   :  { %489 = vmatprep.subr.bf16.mxu0 %v706_v0  ;;  %509 = vmatprep.subr.bf16.mxu1 %v706_v0  ;;  %v577_v25 = vld [vmem:[#allocation8 + $0x28] sm:$0xff]   ;;  %v433_v26 = vld [vmem:[%s856_s2] ss:$0 sm:$0xff]  ;;  %v579_v35 = vld [vmem:[#allocation8 + $0x38] sm:$0xff]   ;;  %s708_s2 = smov [#allocation10]  }
  0x53   :  { %v578_v34 = vld [vmem:[#allocation8 + $0x30] sm:$0xff]   ;;  %s419_s29 = sshll.u32 %s708_s2, 4  ;;  %s420_s29 = int_to_ptr.vmem [resolvable:$true] %s419_s29 }
  0x54   :  { %s668_s20 = scalar_lea.vmem %s420_s29, 256  ;;  %p673_p5 = scmp.lt.s32.totalorder %s420_s29, %s420_s29 }
  0x55   :  { %490 = vmatpush3.bf16.msra.mxu0 %v558_v3  ;;  %510 = vmatpush3.bf16.msra.mxu1 %v566_v8  ;;  %p669_p4 = scmp.ne.s32.totalorder %s420_s29, %s668_s20  ;;  %p674_p6 = scmp.lt.s32.totalorder %s668_s20, %s668_s20 }
  0x56   :  { %491 = vmatprep.subr.bf16.mxu0 %v706_v0  ;;  %511 = vmatprep.subr.bf16.mxu1 %v706_v0 }
  0x57   :  { %p675_p7 = por %p674_p6, %p673_p5 }
  0x59   :  { %492 = vmatpush3.bf16.msra.mxu0 %v559_v5  ;;  %512 = vmatpush3.bf16.msra.mxu1 %v567_v10  ;;  %p676_p8 = pnand %p675_p7, %p669_p4 }
  0x5a   :  { %493 = vmatprep.subr.bf16.mxu0 %v706_v0  ;;  %513 = vmatprep.subr.bf16.mxu1 %v706_v0 }
  0x5d   :  { %494 = vmatpush3.bf16.msra.mxu0 %v560_v7  ;;  %514 = vmatpush3.bf16.msra.mxu1 %v568_v12 }
  0x5e   :  { %495 = vmatprep.subr.bf16.mxu0 %v706_v0  ;;  %515 = vmatprep.subr.bf16.mxu1 %v706_v0 }
  0x61   :  { %496 = vmatpush3.bf16.msra.mxu0 %v561_v9  ;;  %516 = vmatpush3.bf16.msra.mxu1 %v569_v16 }
  0x62   :  { %497 = vmatprep.subr.bf16.mxu0 %v706_v0  ;;  %517 = vmatprep.subr.bf16.mxu1 %v706_v0 }
  0x65   :  { %498 = vmatpush3.bf16.msra.mxu0 %v562_v11  ;;  %518 = vmatpush3.bf16.msra.mxu1 %v570_v18 }
  0x66   :  { %499 = vmatprep.subr.bf16.mxu0 %v706_v0  ;;  %519 = vmatprep.subr.bf16.mxu1 %v706_v0 }
  0x69   :  { %500 = vmatpush3.bf16.msra.mxu0 %v563_v13  ;;  %520 = vmatpush3.bf16.msra.mxu1 %v571_v19 }
  0x6a   :  { %525 = vmatprep.subr.bf16.mxu0 %v706_v0 }
  0x6c   :  { %502 = vmatmul.mubr.bf16.vlgmr.msra.gmra.mrb[0].mxu0 %v79_v17 }
  0x6d   :  { %541 = vmatprep.mubr.msk.bf16.mxu0 %vm707_vm0, %v706_v0  ;;  %526 = vmatpush3.bf16.msra.mxu0 %v572_v20 }
  0x6e   :  { %527 = vmatprep.subr.bf16.mxu0 %v706_v0 }
  0x71   :  { %528 = vmatpush3.bf16.msra.mxu0 %v573_v21 }
  0x72   :  { %529 = vmatprep.subr.bf16.mxu0 %v706_v0 }
  0x75   :  { %530 = vmatpush3.bf16.msra.mxu0 %v574_v22 }
  0x76   :  { %531 = vmatprep.subr.bf16.mxu0 %v706_v0 }
  0x79   :  { %532 = vmatpush3.bf16.msra.mxu0 %v575_v23 }
  0x7a   :  { %533 = vmatprep.subr.bf16.mxu0 %v706_v0 }
  0x7d   :  { %534 = vmatpush3.bf16.msra.mxu0 %v576_v24 }
  0x7e   :  { %535 = vmatprep.subr.bf16.mxu0 %v706_v0 }
  0x81   :  { %536 = vmatpush3.bf16.msra.mxu0 %v577_v25 }
  0x82   :  { %537 = vmatprep.subr.bf16.mxu0 %v706_v0 }
  0x85   :  { %538 = vmatpush3.bf16.msra.mxu0 %v578_v34 }
  0x86   :  { %539 = vmatprep.subr.bf16.mxu0 %v706_v0 }
  0x89   :  { %540 = vmatpush3.bf16.msra.mxu0 %v579_v35 }
 0x13f   :  { %v185_v27 = vpop.f32.mrb[0].mxu0 }
 0x140   :  { %v503_v28 = vpop.f32.mrb[1].mxu0  ;;  %v186_v30 = vadd.f32 %v433_v26, %v185_v27 }
 0x141   :  { %v188_v29 = vpop.f32.mrb[2].mxu0 }
 0x142   :  { %v189_v31 = vadd.f32 %v433_v26, %v188_v29  ;;  %v504_v32 = vpop.f32.mrb[3].mxu0  ;;  %v408_v44 = vmul.f32 0.2, %v186_v30 }
 0x144   :  { %v192_v33 = vpack.c.bf16 %v189_v31, %v186_v30  ;;  %v409_v48 = vmul.f32 0.2, %v189_v31 }
 0x146   :  { %522 = vmatmul.mubr.bf16.vlgmr.msra.gmra.mrb[0].mxu1 %v192_v33 }
 0x219   :  { %v291_v36 = vpop.f32.mrb[0].mxu1 }
 0x21a   :  { %v523_v37 = vpop.f32.mrb[1].mxu1  ;;  %v298_v39 = vmax.f32 %v291_v36, 0.0 }
 0x21b   :  { %v294_v38 = vpop.f32.mrb[2].mxu1 }
 0x21c   :  { %v299_v40 = vmax.f32 %v294_v38, 0.0  ;;  %v524_v41 = vpop.f32.mrb[3].mxu1 }
 0x21e   :  { %v300_v42 = vpack.c.bf16 %v299_v40, %v298_v39 }
 0x220   :  { %542 = vmatmul.mubr.bf16.vlgmr.msra.gmra.mrb[4].mxu0 %v300_v42 }
 0x2f3   :  { %v399_v43 = vpop.f32.mrb[4].mxu0 }
 0x2f4   :  { %v406_v45 = vmax.f32 %v399_v43, 0.0  ;;  %v543_v46 = vpop.f32.mrb[5].mxu0 }
 0x2f5   :  { %v402_v47 = vpop.f32.mrb[6].mxu0 }
 0x2f6   :  { %v410_v49 = vadd.f32 %v408_v44, %v406_v45  ;;  %v407_v50 = vmax.f32 %v402_v47, 0.0  ;;  %v544_v51 = vpop.f32.mrb[7].mxu0 }
 0x2f8   :  { %412 = vst [vmem:[#allocation10] sm:$0xff] %v410_v49  ;;  %v411_v52 = vadd.f32 %v409_v48, %v407_v50 }
 0x2fa   :  { %413 = vst [vmem:[#allocation10 + $0x8] sm:$0xff] %v411_v52 }
 0x2fb   :  { %679 = shalt.err (!%p676_p8)
}
 0x2fc   :  { %s680_s23 = scalar_lea.hbm %s859_s5, 256 }
 0x2fd   :  { %p681_p9 = scmp.ne.s32.totalorder %s859_s5, %s680_s23  ;;  %p684_p10 = scmp.lt.u32.totalorder %s680_s23, %s859_s5 }
 0x2ff   :  { %p686_p11 = pnand %p684_p10, %p681_p9 }
 0x301   :  { %689 = shalt.err (!%p686_p11)
}
 0x302   :  { %425 = dma.vmem_to_hbm [thread:$0]  %s420_s29, 256, %s859_s5, [#allocation4], %s702_s1, %s702_s1, %s703_s17  }
 0x303   :  { %696 = dma.done.wait [#allocation4], 256  }
 0x304   :  { %697 = vsyncadd [#allocation4], 4294967040 }
 0x305   :  { %429 = vsyncpa [#allocation3], 1 }
 0x306   :  { %430 = vsyncpa [#allocation6], 1 }
 0x307   :  { %431 = vsyncpa [#allocation9], 1 }
 0x308   :  { %432 = vsyncpa [#allocation4], 1 }

</bundles_post_ra>
